<compile_context>
chip_gen: v7x
topology: tpu7x:2x2x1
jax: 0.10.0
libtpu: 0.0.40
codegen_flags: <defaults>
</compile_context>

<pallas_src>
import functools

import jax
import jax.numpy as jnp
from jax import lax
from jax.experimental import pallas as pl
from jax.experimental.pallas import tpu as pltpu


def _round_up(x, m):
    return pl.cdiv(x, m) * m


def _vmem_capacity_bytes():
    """Physical VMEM of the local chip; conservative fallback if unknown."""
    try:
        return int(pltpu.get_tpu_info().vmem_capacity_bytes)
    except Exception:
        return 64 << 20  # assume the tightest generation (v7x-class, 64 MiB)


def _lse_sum_kernel(x_ref, o_ref, *, n_valid, tile_n):
    """Write the sum over this tile's valid rows of logsumexp(logits[row, :])."""
    i = pl.program_id(0)

    logits = x_ref[...].astype(jnp.float32)                        # (TILE_N, C)
    tn, _ = logits.shape

    # Numerically stable per-row logsumexp.
    row_max = jnp.max(logits, axis=-1, keepdims=True)              # (TILE_N, 1)
    shifted = logits - row_max
    sumexp = jnp.sum(jnp.exp(shifted), axis=-1, keepdims=True)     # (TILE_N, 1)
    lse = row_max + jnp.log(sumexp)                                # (TILE_N, 1)

    # Mask rows past the real batch: the ragged tail tile holds undefined data
    # (possibly inf/NaN).  Keep this a SELECT, not a multiply-by-mask, so NaNs
    # in dropped rows never propagate.
    rows = i * tile_n + lax.broadcasted_iota(jnp.int32, (tn, 1), 0)
    valid = rows < n_valid
    total = jnp.sum(jnp.where(valid, lse, 0.0))                    # scalar

    # Lane-dense unmasked store of this tile's partial (scalar broadcast into
    # the full (1, 8, 128) block).
    o_ref[...] = jnp.zeros_like(o_ref) + total


def my_loss(outputs, labels, *, alpha=0.25, gamma=2):
    """Pallas implementation of MyLoss.forward.

    outputs: (N, C) float logits (any float dtype; streamed natively)
    labels:  (N,)   integer class indices
    returns: () float32 scalar loss
    """
    del alpha  # stored but unused in the reference forward pass
    n, c = outputs.shape
    labels = labels.astype(jnp.int32)

    dtype_bytes = jnp.dtype(outputs.dtype).itemsize
    row_bytes = dtype_bytes * c
    # Sublane multiple for the native dtype (f32: 8, bf16: 16, int8/fp8: 32).
    mult = max(8, 32 // max(1, dtype_bytes))

    # --- generation-aware tile sizing (by bytes, not rows) ------------------
    vmem_cap = _vmem_capacity_bytes()
    target_tile_bytes = (8 << 20) if vmem_cap >= (96 << 20) else (4 << 20)

    tile_cap = max(mult, ((target_tile_bytes // row_bytes) // mult) * mult)
    num_blocks = int(pl.cdiv(n, tile_cap))
    # If the whole batch fits in one large tile, split it into two balanced
    # tiles so both v7x TensorCores get work; a single extra (large) step is
    # harmless on 1-TC chips.
    if num_blocks == 1 and n * row_bytes >= (2 << 20):
        num_blocks = 2
    tile_n = max(mult, int(_round_up(pl.cdiv(n, num_blocks), mult)))
    num_blocks = int(pl.cdiv(n, tile_n))

    # VMEM budget: double-buffered logits tile + headroom, capped per chip.
    vmem_limit = 2 * tile_n * row_bytes + (4 << 20)
    vmem_limit = int(min(max(vmem_limit, 16 << 20),
                         min((vmem_cap * 3) // 4, 96 << 20)))

    kernel = functools.partial(_lse_sum_kernel, n_valid=n, tile_n=tile_n)

    cost = pl.CostEstimate(
        flops=3 * n * c,                         # max cmp + sub + sum adds
        transcendentals=n * c + n,               # exp per element + log per row
        bytes_accessed=n * row_bytes + num_blocks * 8 * 128 * 4,
    )

    partials = pl.pallas_call(
        kernel,
        out_shape=jax.ShapeDtypeStruct((num_blocks, 8, 128), jnp.float32),
        grid_spec=pltpu.PrefetchScalarGridSpec(
            num_scalar_prefetch=0,
            grid=(num_blocks,),
            in_specs=[pl.BlockSpec((tile_n, c), lambda i: (i, 0))],
            out_specs=pl.BlockSpec((1, 8, 128), lambda i: (i, 0, 0)),
        ),
        compiler_params=pltpu.CompilerParams(
            dimension_semantics=("parallel",),
            vmem_limit_bytes=vmem_limit,
        ),
        cost_estimate=cost,
    )(outputs)

    # ---- scalar epilogue in plain JAX (XLA fuses it) ------------------------
    # O(N) gather of the label logit, per the perf review (removes the one-hot
    # compare/select and the lane-padded label buffer from the kernel).
    picked = jnp.take_along_axis(outputs, labels[:, None], axis=-1)[:, 0]
    picked_sum = jnp.sum(picked.astype(jnp.float32))

    lse_sum = jnp.sum(partials[:, 0, 0])
    ce = (lse_sum - picked_sum) / jnp.float32(n)   # mean cross-entropy
    logpt = -ce
    pt = jnp.exp(logpt)
    one_minus_pt = 1.0 - pt
    g = float(gamma)
    if g == 2.0:
        focal = jnp.square(one_minus_pt)           # single VPU mul, no EUP pow
    elif g == float(int(g)) and 0.0 <= g <= 8.0:
        focal = jnp.float32(1.0)
        for _ in range(int(g)):                    # unrolled integer power
            focal = focal * one_minus_pt
    else:
        focal = one_minus_pt ** g
    return -focal * logpt


def _reference_loss(outputs, labels, gamma=2):
    # Pure-JAX reference matching torch.nn.functional.cross_entropy (mean).
    logp = jax.nn.log_softmax(outputs.astype(jnp.float32), axis=-1)
    nll = -jnp.take_along_axis(logp, labels[:, None], axis=-1)[:, 0]
    ce = jnp.mean(nll)
    logpt = -ce
    return -((1.0 - jnp.exp(logpt)) ** gamma) * logpt


if __name__ == "__main__":
    key = jax.random.PRNGKey(0)

    # Case 1: small single-tile case (matches the module spec scale).
    k1, k2 = jax.random.split(key)
    n1, c1 = 8, 32
    x1 = jax.random.normal(k1, (n1, c1), dtype=jnp.float32)
    y1 = jax.random.randint(k2, (n1,), 0, c1, dtype=jnp.int32)
    loss1 = my_loss(x1, y1, alpha=0.25, gamma=2)
    jax.block_until_ready(loss1)
    ref1 = _reference_loss(x1, y1, gamma=2)
    assert jnp.allclose(loss1, ref1, atol=1e-4, rtol=1e-4), (loss1, ref1)

    # Case 2: ragged batch (N not a multiple of 8) exercising the tail mask
    # with no materialized padding.
    k3, k4 = jax.random.split(k2)
    n2, c2 = 1203, 160
    x2 = jax.random.normal(k3, (n2, c2), dtype=jnp.float32)
    y2 = jax.random.randint(k4, (n2,), 0, c2, dtype=jnp.int32)
    loss2 = my_loss(x2, y2, alpha=0.25, gamma=2)
    jax.block_until_ready(loss2)
    ref2 = _reference_loss(x2, y2, gamma=2)
    assert jnp.allclose(loss2, ref2, atol=1e-4, rtol=1e-4), (loss2, ref2)

    # Case 3: multi-block path (balanced "parallel" tiles + ragged tail).
    k5, k6 = jax.random.split(k4)
    n3, c3 = 4100, 256
    x3 = jax.random.normal(k5, (n3, c3), dtype=jnp.float32)
    y3 = jax.random.randint(k6, (n3,), 0, c3, dtype=jnp.int32)
    loss3 = my_loss(x3, y3, alpha=0.25, gamma=2)
    jax.block_until_ready(loss3)
    ref3 = _reference_loss(x3, y3, gamma=2)
    assert jnp.allclose(loss3, ref3, atol=1e-4, rtol=1e-4), (loss3, ref3)

    print("KERNEL_OK")
</pallas_src>

<mosaic_0001>
module attributes {stable_mosaic.version = 11 : i64} {
  func.func @_lse_sum_kernel(%arg0: i32, %arg1: memref<8x32xf32, #tpu.memory_space<vmem>>, %arg2: memref<1x8x128xf32, #tpu.memory_space<vmem>>) attributes {dimension_semantics = [#tpu.dimension_semantics<parallel>], iteration_bounds = array<i64: 1>, scalar_prefetch = 0 : i64, scratch_operands = 0 : i64, tpu.core_type = #tpu.core_type<tc>, window_params = [{transform_indices = @transform_0, window_bounds = array<i64: 8, 32>}, {transform_indices = @transform_1, window_bounds = array<i64: 1, 8, 128>}]} {
    %c0 = arith.constant 0 : index
    %c0_0 = arith.constant 0 : index
    %0 = vector.load %arg1[%c0, %c0_0] : memref<8x32xf32, #tpu.memory_space<vmem>>, vector<8x32xf32>
    %cst = arith.constant dense<0xFF800000> : vector<8xf32>
    %1 = vector.multi_reduction <maximumf>, %0, %cst [1] : vector<8x32xf32> to vector<8xf32>
    %2 = vector.shape_cast %1 : vector<8xf32> to vector<8x1xf32>
    %3 = vector.broadcast %2 : vector<8x1xf32> to vector<8x32xf32>
    %4 = arith.subf %0, %3 : vector<8x32xf32>
    %5 = math.exp %4 : vector<8x32xf32>
    %cst_1 = arith.constant dense<0.000000e+00> : vector<8xf32>
    %6 = vector.multi_reduction <add>, %5, %cst_1 [1] : vector<8x32xf32> to vector<8xf32>
    %7 = vector.shape_cast %6 : vector<8xf32> to vector<8x1xf32>
    %8 = math.log %7 : vector<8x1xf32>
    %9 = arith.addf %2, %8 : vector<8x1xf32>
    %c8_i32 = arith.constant 8 : i32
    %10 = arith.muli %arg0, %c8_i32 : i32
    %11 = tpu.iota {dimensions = array<i32: 0>} : vector<8x1xi32>
    %12 = vector.broadcast %10 : i32 to vector<8x1xi32>
    %13 = arith.addi %12, %11 : vector<8x1xi32>
    %c8_i32_2 = arith.constant 8 : i32
    %14 = vector.broadcast %c8_i32_2 : i32 to vector<8x1xi32>
    %15 = arith.cmpi slt, %13, %14 : vector<8x1xi32>
    %cst_3 = arith.constant 0.000000e+00 : f32
    %16 = vector.broadcast %cst_3 : f32 to vector<8x1xf32>
    %17 = arith.select %15, %9, %16 : vector<8x1xi1>, vector<8x1xf32>
    %18 = vector.shape_cast %17 : vector<8x1xf32> to vector<1x8x1xf32>
    %cst_4 = arith.constant dense<0.000000e+00> : vector<1xf32>
    %19 = vector.multi_reduction <add>, %18, %cst_4 [1, 2] : vector<1x8x1xf32> to vector<1xf32>
    %20 = vector.shape_cast %19 : vector<1xf32> to vector<1x1x1xf32>
    %21 = vector.extract %20[0, 0, 0] : f32 from vector<1x1x1xf32>
    %cst_5 = arith.constant 0.000000e+00 : f32
    %22 = vector.broadcast %cst_5 : f32 to vector<1x8x128xf32>
    %23 = vector.broadcast %21 : f32 to vector<1x8x128xf32>
    %24 = arith.addf %22, %23 : vector<1x8x128xf32>
    %c0_6 = arith.constant 0 : index
    %c0_7 = arith.constant 0 : index
    %c0_8 = arith.constant 0 : index
    %25 = vector.load %arg2[%c0_6, %c0_7, %c0_8] : memref<1x8x128xf32, #tpu.memory_space<vmem>>, vector<1x8x128xf32>
    tpu.vector_store %arg2[%c0_6, %c0_7, %c0_8], %24 {strides = array<i32>} : memref<1x8x128xf32, #tpu.memory_space<vmem>>, vector<1x8x128xf32>,
    return
  }
  func.func @transform_0(%arg0: i32) -> (i32, i32) {
    %c0_i32 = arith.constant 0 : i32
    %c0_i32_0 = arith.constant 0 : i32
    return %arg0, %c0_i32 : i32, i32
  }
  func.func @transform_1(%arg0: i32) -> (i32, i32, i32) {
    %c0_i32 = arith.constant 0 : i32
    %c0_i32_0 = arith.constant 0 : i32
    %c0_i32_1 = arith.constant 0 : i32
    return %arg0, %c0_i32, %c0_i32_0 : i32, i32, i32
  }
}

</mosaic_0001>

<bundles_post_ra>
// kernel: tpu_custom_call.1
= control target key start
LH: loop header
LB: loop body
LE: loop exit
PB: predicated region body
PF: predicated region fallthrough
CT: control target
= control target key end

     0   :  { %6 = vsyncpa [#allocation3], 0  ;;  %s163_s0 = inlined_call_operand.hbm [shape: f32[8,32], index: 0, kind: input, shape index: {}]   ;;  %s164_s1 = inlined_call_operand.hbm [shape: f32[1,8,128], index: 1, kind: output, shape index: {}]  }
   0x1   :  { %7 = vsyncpa [#allocation4], 0  ;;  %s127_s6 = smov [#allocation2]   ;;  %s79_s10 = scalar_lea.hbm %s163_s0, 128 }
   0x2   :  { %s14_s7 = sshll.u32 %s127_s6, 4  ;;  %p80_p0 = scmp.ne.s32.totalorder %s163_s0, %s79_s10  ;;  %s15_s7 = int_to_ptr.vmem [resolvable:$true] %s14_s7 }
   0x3   :  { %p83_p1 = scmp.lt.u32.totalorder %s79_s10, %s163_s0 }
   0x5   :  { %p85_p2 = pnand %p83_p1, %p80_p0 }
   0x7   :  { %88 = shalt.err (!%p85_p2)
}
   0x8   :  { %s89_s15 = scalar_lea.vmem %s15_s7, 128  ;;  %p94_p4 = scmp.lt.s32.totalorder %s15_s7, %s15_s7 }
   0x9   :  { %p90_p3 = scmp.ne.s32.totalorder %s15_s7, %s89_s15  ;;  %p95_p5 = scmp.lt.s32.totalorder %s89_s15, %s89_s15 }
   0xb   :  { %p96_p6 = por %p95_p5, %p94_p4 }
   0xd   :  { %p97_p7 = pnand %p96_p6, %p90_p3 }
   0xf   :  { %100 = shalt.err (!%p97_p7)
}
  0x10   :  { %17 = dma.hbm_to_vmem [thread:$0]  %s163_s0, 128, %s15_s7, [#allocation3]  }
  0x11   :  { %123 = dma.done.wait [#allocation3], 128  }
  0x12   :  { %124 = vsyncadd [#allocation3], 4294967168  ;;  %vm22_vm0 = vcmask 261120   ;;  %v21_v0 = vld [vmem:[#allocation2] sm:$0xff]  ;;  %vm42_vm1 = vcmask 7168   ;;  %s128_s0 = smov [#allocation5]  }
  0x13   :  { %v23_v1 = vsel %vm22_vm0, %v21_v0, -inf  ;;  %s62_s18 = sshll.u32 %s128_s0, 4  ;;  %s63_s18 = int_to_ptr.vmem [resolvable:$true] %s62_s18 }
  0x14   :  { %24 = vmax.xlane.f32.xlu0 %v23_v1  ;;  %s101_s20 = scalar_lea.vmem %s63_s18, 128  ;;  %p106_p9 = scmp.lt.s32.totalorder %s63_s18, %s63_s18 }
  0x15   :  { %p102_p8 = scmp.ne.s32.totalorder %s63_s18, %s101_s20  ;;  %p107_p10 = scmp.lt.s32.totalorder %s101_s20, %s101_s20 }
  0x17   :  { %p108_p11 = por %p107_p10, %p106_p9 }
  0x19   :  { %p109_p12 = pnand %p108_p11, %p102_p8 }
  0xa1   :  { %v25_v2 = vpop.xlane.xlu0 %24 }
  0xa2   :  { %v26_v3 = vsub.f32 %v21_v0, %v25_v2 }
  0xa4   :  { %v27_v4 = vmul.f32 1.442695, %v26_v3 }
  0xa6   :  { %75 = vpow2.f32 %v27_v4 }
  0xb0   :  { %v76_v5 = vpop.eup %75 }
  0xb1   :  { %v29_v6 = vsel %vm22_vm0, %v76_v5, 0.0 }
  0xb2   :  { %30 = vadd.xlane.f32.xlu0 %v29_v6 }
 0x13f   :  { %v31_v7 = vpop.xlane.xlu0 %30 }
 0x140   :  { %77 = vlog2.f32 %v31_v7 }
 0x14a   :  { %v78_v8 = vpop.eup %77 }
 0x14b   :  { %v33_v9 = vmul.f32 0.6931472, %v78_v8 }
 0x14d   :  { %v34_v10 = vadd.f32 %v33_v9, %v25_v2 }
 0x14f   :  { %v43_v11 = vsel %vm42_vm1, %v34_v10, 0.0 }
 0x150   :  { %44 = vadd.xlane.f32.xlu1 %v43_v11 }
 0x1dd   :  { %v45_v12 = vpop.xlane.xlu1 %44 }
 0x1de   :  { %v46_v13 = vrot.slane %v45_v12, 4 }
 0x1e0   :  { %v47_v14 = vadd.f32 %v46_v13, %v45_v12 }
 0x1e2   :  { %v48_v15 = vrot.slane %v47_v14, 2 }
 0x1e4   :  { %v49_v16 = vadd.f32 %v48_v15, %v47_v14 }
 0x1e6   :  { %v50_v17 = vrot.slane %v49_v16, 1 }
 0x1e8   :  { %v51_v18 = vadd.f32 %v50_v17, %v49_v16 }
 0x1ea   :  { %71 = vpush %v51_v18 }
 0x21b   :  { %s72_s19 = spop %71 }
 0x21c   :  { %v53_v19 = vstv %s72_s19 }
 0x21d   :  { %55 = vst [vmem:[#allocation5] sm:$0xff] %v53_v19 }
 0x21e   :  { %112 = shalt.err (!%p109_p12)
}
 0x21f   :  { %s113_s23 = scalar_lea.hbm %s164_s1, 128 }
 0x220   :  { %p114_p13 = scmp.ne.s32.totalorder %s164_s1, %s113_s23  ;;  %p117_p0 = scmp.lt.u32.totalorder %s113_s23, %s164_s1 }
 0x222   :  { %p119_p1 = pnand %p117_p0, %p114_p13 }
 0x224   :  { %122 = shalt.err (!%p119_p1)
}
 0x225   :  { %65 = dma.vmem_to_hbm [thread:$0]  %s63_s18, 128, %s164_s1, [#allocation4]  }
 0x226   :  { %125 = dma.done.wait [#allocation4], 128  }
 0x227   :  { %126 = vsyncadd [#allocation4], 4294967168 }
 0x228   :  { %69 = vsyncpa [#allocation3], 1 }
 0x229   :  { %70 = vsyncpa [#allocation4], 1 }

</bundles_post_ra>
